<compile_context>
chip_gen: v5e
topology: v5e:2x2
jax: 0.10.0
libtpu: 0.0.40
codegen_flags: <defaults>
</compile_context>

<pallas_src>
import functools

import jax
import jax.numpy as jnp
from jax import lax
from jax.experimental import pallas as pl
from jax.experimental.pallas import tpu as pltpu

KERNEL_SIZE = 7
PAD = 3
LEAKY_SLOPE = 0.01      # nn.LeakyReLU() default
BN_EPS = 1e-5           # nn.BatchNorm1d default
POOL_CHUNK = 128        # lanes per pooling matmul chunk (keeps pooling O(L))
VMEM_LIMIT = 32 * 1024 * 1024
_HIGHEST = jax.lax.Precision.HIGHEST  # reference only


def _activate(v, activation):
    if activation == "leaky":
        return jnp.where(v >= 0, v, LEAKY_SLOPE * v)
    if activation == "relu":
        return jnp.maximum(v, 0.0)
    if activation == "sigmoid":
        return jax.nn.sigmoid(v)
    raise ValueError(f"Unknown activation: {activation}")


def _im2col(xn, length):
    """Build the (K*C_in, L) im2col matrix for one batch element.

    The +/-3 conv halo is handled in-register: each tap window is a lane rotation
    (pltpu.roll -> XLU slot, no HBM padding / lane-misaligned loads) with the
    wrapped lanes masked to zero (the conv's zero padding).
    Row order is taps-major: row = k * C_in + i, matching the host-side weight
    reshape w.transpose(0, 2, 1).reshape(C_out, K*C_in).
    """
    lane = lax.broadcasted_iota(jnp.int32, (1, length), 1)
    parts = []
    for k in range(KERNEL_SIZE):
        d = k - PAD                                    # window offset in [-3, 3]
        if d == 0:
            parts.append(xn)
            continue
        win = pltpu.roll(xn, shift=(-d) % length, axis=1)   # win[:, l] = x[:, l + d]
        if d > 0:
            win = jnp.where(lane < (length - d), win, 0.0)  # zero-pad right edge
        else:
            win = jnp.where(lane >= (-d), win, 0.0)         # zero-pad left edge
        parts.append(win)
    return jnp.concatenate(parts, axis=0)              # (K*C_in, L)


def _conv_act_kernel(x_ref, w_ref, b_ref, *out_refs,
                     activation, batch_norm, nb, length):
    """Conv1d(k=7, pad=3) + bias + activation for a block of `nb` batch elements.

    x_ref : (nb, C_in, L)   un-padded input block (native dtype, cast in-kernel)
    w_ref : (C_out, K*C_in) im2col-flattened weights (taps-major columns)
    b_ref : (C_out, 1)      bias
    outs  : y (nb, C_out, L) [, sum (1, C_out, 1), sumsq (1, C_out, 1)]
    """
    if batch_norm:
        y_ref, sum_ref, sq_ref = out_refs
    else:
        (y_ref,) = out_refs

    w = w_ref[...]
    b = b_ref[...]
    if batch_norm:
        bsum = jnp.zeros(b.shape, jnp.float32)
        bsq = jnp.zeros(b.shape, jnp.float32)

    for n in range(nb):                                # static unroll, nb is small
        xn = x_ref[n].astype(jnp.float32)              # (C_in, L)
        cols = _im2col(xn, length)                     # (K*C_in, L)
        # One MXU matmul per element (contraction = K*C_in instead of 7x C_in),
        # default precision (bf16 MXU passes), f32 accumulation.
        y = jnp.dot(w, cols, preferred_element_type=jnp.float32) + b
        y = _activate(y, activation)
        y_ref[n] = y.astype(y_ref.dtype)               # bf16 intermediate (if pass 2)
        if batch_norm:
            # f32 partial sums for the training-mode batch statistics.
            bsum = bsum + jnp.sum(y, axis=-1, keepdims=True)
            bsq = bsq + jnp.sum(y * y, axis=-1, keepdims=True)

    if batch_norm:
        sum_ref[0] = bsum
        sq_ref[0] = bsq


def _bn_cat_pool_kernel(*refs, batch_norm, use_residual, pool, nb):
    """Affine BN (precomputed scale/shift) + residual concat + AvgPool1d(2,2)."""
    idx = 0
    x_ref = None
    if use_residual:
        x_ref = refs[idx]; idx += 1
    y_ref = refs[idx]; idx += 1
    scale = shift = None
    if batch_norm:
        scale = refs[idx][...]                         # (C_out, 1)
        shift = refs[idx + 1][...]
        idx += 2
    pm = None
    if pool:
        pm = refs[idx][...]                            # (CHUNK, CHUNK//2), resident
        idx += 1
    o_ref = refs[idx]

    for n in range(nb):
        y = y_ref[n].astype(jnp.float32)               # (C_out, L)
        if batch_norm:
            y = y * scale + shift                      # hoisted BN finalization
        if use_residual:
            out = jnp.concatenate([x_ref[n].astype(jnp.float32), y], axis=0)
        else:
            out = y
        if pool:
            length = out.shape[-1]
            chunk = pm.shape[0]
            # O(L) pooling: one small MXU matmul per lane-aligned chunk against a
            # constant (chunk, chunk//2) matrix passed in from the host.
            parts = [jnp.dot(out[:, c0:c0 + chunk], pm,
                             preferred_element_type=jnp.float32)
                     for c0 in range(0, length, chunk)]
            out = parts[0] if len(parts) == 1 else jnp.concatenate(parts, axis=-1)
        o_ref[n] = out.astype(o_ref.dtype)


def _pick_batch_block(n, c_in, c_out, length, bytes_budget=4 << 20):
    """Largest divisor of n whose per-step working set stays within the budget."""
    per_elem = (c_in + 2 * c_out + KERNEL_SIZE * c_in) * length * 4
    nb = max(1, min(n, bytes_budget // max(per_elem, 1)))
    while n % nb:
        nb -= 1
    return nb


def init_conv_block(key, prev_dim, curr_dim, *, activation="leaky",
                    batch_norm=True, pool=False):
    """Mirror of ConvBlock.__init__: derives residual flag / out_dim, builds params."""
    use_residual = (curr_dim - prev_dim) > 1
    out_dim = curr_dim - prev_dim if use_residual else curr_dim
    kw, kb, kg, kbt = jax.random.split(key, 4)
    bound = 1.0 / float(prev_dim * KERNEL_SIZE) ** 0.5
    return dict(
        w=jax.random.uniform(kw, (out_dim, prev_dim, KERNEL_SIZE), jnp.float32,
                             -bound, bound),
        b=jax.random.uniform(kb, (out_dim,), jnp.float32, -bound, bound),
        gamma=1.0 + 0.1 * jax.random.normal(kg, (out_dim,), jnp.float32),
        beta=0.1 * jax.random.normal(kbt, (out_dim,), jnp.float32),
        use_residual=use_residual,
        activation=activation,
        batch_norm=batch_norm,
        pool=pool,
    )


def conv_block_forward(params, x):
    """ConvBlock.forward(x) for x of shape (N, C_in, L); L a multiple of 128."""
    activation = params["activation"]
    batch_norm = params["batch_norm"]
    use_residual = params["use_residual"]
    pool = params["pool"]

    n, c_in, length = x.shape
    c_out = params["w"].shape[0]
    assert length % 128 == 0, "lane-dense path assumes L % 128 == 0"
    if pool:
        assert length % 2 == 0, "AvgPool1d(2,2) path assumes even L"

    nb = _pick_batch_block(n, c_in, c_out, length)
    n_blocks = n // nb

    # Tiny host-side parameter prep only (NO padded copy of x is materialized):
    # taps-major im2col weight layout + lane-broadcastable bias.
    w_flat = jnp.transpose(params["w"].astype(jnp.float32), (0, 2, 1)).reshape(
        c_out, KERNEL_SIZE * c_in)
    b2 = params["b"].astype(jnp.float32).reshape(c_out, 1)

    needs_pass2 = batch_norm or use_residual or pool
    # bf16 inter-pass intermediate halves the dominant inter-pass HBM traffic.
    y_dtype = jnp.bfloat16 if needs_pass2 else x.dtype

    # --- pass 1: conv + activation (+ per-block BN partial sums) -------------
    out_shape1 = [jax.ShapeDtypeStruct((n, c_out, length), y_dtype)]
    out_specs1 = [pl.BlockSpec((nb, c_out, length), lambda i: (i, 0, 0))]
    if batch_norm:
        out_shape1 += [jax.ShapeDtypeStruct((n_blocks, c_out, 1), jnp.float32)] * 2
        out_specs1 += [pl.BlockSpec((1, c_out, 1), lambda i: (i, 0, 0))] * 2

    kernel1 = functools.partial(_conv_act_kernel, activation=activation,
                                batch_norm=batch_norm, nb=nb, length=length)
    res1 = pl.pallas_call(
        kernel1,
        grid=(n_blocks,),
        in_specs=[
            pl.BlockSpec((nb, c_in, length), lambda i: (i, 0, 0)),
            pl.BlockSpec((c_out, KERNEL_SIZE * c_in), lambda i: (0, 0)),
            pl.BlockSpec((c_out, 1), lambda i: (0, 0)),
        ],
        out_specs=tuple(out_specs1),
        out_shape=tuple(out_shape1),
        compiler_params=pltpu.CompilerParams(
            dimension_semantics=("parallel",), vmem_limit_bytes=VMEM_LIMIT),
    )(x, w_flat, b2)
    if batch_norm:
        y, ssum, ssq = res1
    else:
        (y,) = res1

    # Nothing else to do -> no extra HBM round trip for a second pass.
    if not needs_pass2:
        return y

    # BN finalization hoisted out of the per-step kernel body: a tiny O(C_out)
    # host-side op producing per-channel scale/shift for pass 2.
    bn_args = []
    if batch_norm:
        cnt = float(n * length)
        mean = jnp.sum(ssum, axis=0) / cnt                       # (C_out, 1)
        var = jnp.maximum(jnp.sum(ssq, axis=0) / cnt - mean * mean, 0.0)  # biased var
        scale = params["gamma"].astype(jnp.float32).reshape(c_out, 1) * lax.rsqrt(var + BN_EPS)
        shift = params["beta"].astype(jnp.float32).reshape(c_out, 1) - mean * scale
        bn_args = [scale, shift]

    c_total = c_in + c_out if use_residual else c_out
    l_out = length // 2 if pool else length

    # --- pass 2: affine BN + residual concat + avg-pool ----------------------
    in_arrays, in_specs2 = [], []
    if use_residual:
        in_arrays.append(x)                                       # native dtype
        in_specs2.append(pl.BlockSpec((nb, c_in, length), lambda i: (i, 0, 0)))
    in_arrays.append(y)
    in_specs2.append(pl.BlockSpec((nb, c_out, length), lambda i: (i, 0, 0)))
    if batch_norm:
        in_arrays += bn_args
        in_specs2 += [pl.BlockSpec((c_out, 1), lambda i: (0, 0))] * 2
    if pool:
        chunk = POOL_CHUNK if length % POOL_CHUNK == 0 else length
        rr = jnp.arange(chunk)[:, None]
        cc = jnp.arange(chunk // 2)[None, :]
        pool_mat = jnp.where((rr // 2) == cc, 0.5, 0.0).astype(jnp.float32)
        in_arrays.append(pool_mat)
        in_specs2.append(pl.BlockSpec((chunk, chunk // 2), lambda i: (0, 0)))

    kernel2 = functools.partial(_bn_cat_pool_kernel, batch_norm=batch_norm,
                                use_residual=use_residual, pool=pool, nb=nb)
    out = pl.pallas_call(
        kernel2,
        grid=(n_blocks,),
        in_specs=in_specs2,
        out_specs=pl.BlockSpec((nb, c_total, l_out), lambda i: (i, 0, 0)),
        out_shape=jax.ShapeDtypeStruct((n, c_total, l_out), x.dtype),
        compiler_params=pltpu.CompilerParams(
            dimension_semantics=("parallel",), vmem_limit_bytes=VMEM_LIMIT),
    )(*in_arrays)
    return out

# TODO(synk): BatchNorm1d's running-stat (momentum) update is a training-time
# side effect and is not produced; only the normalization forward is computed.
# TODO(synk): for production-scale L, add an L-tile grid axis (halo via roll on a
# slightly-overlapped tile or manual DMA) and re-derive tile sizes for v7x's
# 64 MiB VMEM so both TensorCores get >= 4 grid steps each.


def conv_block_reference(params, x):
    """Pure-JAX f32 reference mirroring the PyTorch forward (training-mode BN)."""
    w = params["w"].astype(jnp.float32)
    b = params["b"].astype(jnp.float32)
    y = lax.conv_general_dilated(
        x.astype(jnp.float32), w, window_strides=(1,), padding=[(PAD, PAD)],
        dimension_numbers=("NCH", "OIH", "NCH"), precision=_HIGHEST)
    y = y + b[None, :, None]
    y = _activate(y, params["activation"])
    if params["batch_norm"]:
        mean = jnp.mean(y, axis=(0, 2), keepdims=True)
        var = jnp.mean(jnp.square(y), axis=(0, 2), keepdims=True) - jnp.square(mean)
        y = (y - mean) * lax.rsqrt(var + BN_EPS)
        y = y * params["gamma"][None, :, None] + params["beta"][None, :, None]
    if params["use_residual"]:
        out = jnp.concatenate([x.astype(jnp.float32), y], axis=1)
    else:
        out = y
    if params["pool"]:
        out = 0.5 * (out[:, :, 0::2] + out[:, :, 1::2])
    return out.astype(x.dtype)


if __name__ == "__main__":
    key = jax.random.PRNGKey(0)
    kx, kp_a, kp_b = jax.random.split(key, 3)

    # Small shapes: batch=2, channels=8 (sublane aligned), seq length=128 (lane-dense).
    n, prev_dim, length = 2, 8, 128
    x = jax.random.normal(kx, (n, prev_dim, length), dtype=jnp.float32)

    # Config A: ConvBlock(8 -> 24): residual concat, BatchNorm, LeakyReLU, AvgPool.
    params_a = init_conv_block(kp_a, prev_dim, 24,
                               activation="leaky", batch_norm=True, pool=True)
    out_a = jax.block_until_ready(conv_block_forward(params_a, x))
    ref_a = conv_block_reference(params_a, x)
    assert out_a.shape == (n, 24, length // 2), out_a.shape
    err_a = jnp.abs(out_a.astype(jnp.float32) - ref_a.astype(jnp.float32))
    max_a, mean_a = float(jnp.max(err_a)), float(jnp.mean(err_a))
    # Tolerance loosened vs an f32/HIGHEST reference: default-precision (bf16) MXU
    # passes + bf16 inter-pass intermediate, amplified by BN's 1/std (~3x).
    assert max_a < 8e-2 and mean_a < 1.5e-2, (max_a, mean_a)

    # Config B: ConvBlock(8 -> 8): plain conv + ReLU (single pass, f32 output).
    params_b = init_conv_block(kp_b, prev_dim, prev_dim,
                               activation="relu", batch_norm=False, pool=False)
    out_b = jax.block_until_ready(conv_block_forward(params_b, x))
    ref_b = conv_block_reference(params_b, x)
    assert out_b.shape == (n, prev_dim, length), out_b.shape
    err_b = jnp.abs(out_b.astype(jnp.float32) - ref_b.astype(jnp.float32))
    max_b, mean_b = float(jnp.max(err_b)), float(jnp.mean(err_b))
    assert max_b < 3e-2 and mean_b < 5e-3, (max_b, mean_b)

    print("KERNEL_OK")
</pallas_src>

<mosaic_0001>
module attributes {stable_mosaic.version = 11 : i64} {
  func.func @_conv_act_kernel(%arg0: i32, %arg1: memref<2x8x128xf32, #tpu.memory_space<vmem>>, %arg2: memref<16x56xf32, #tpu.memory_space<vmem>>, %arg3: memref<16x1xf32, #tpu.memory_space<vmem>>, %arg4: memref<2x16x128xbf16, #tpu.memory_space<vmem>>, %arg5: memref<1x16x1xf32, #tpu.memory_space<vmem>>, %arg6: memref<1x16x1xf32, #tpu.memory_space<vmem>>) attributes {dimension_semantics = [#tpu.dimension_semantics<parallel>], iteration_bounds = array<i64: 1>, scalar_prefetch = 0 : i64, scratch_operands = 0 : i64, tpu.core_type = #tpu.core_type<tc>, window_params = [{transform_indices = @transform_0, window_bounds = array<i64: 2, 8, 128>}, {pipeline_mode = #tpu.pipeline_mode<synchronous>, transform_indices = @transform_1, window_bounds = array<i64: 16, 56>}, {pipeline_mode = #tpu.pipeline_mode<synchronous>, transform_indices = @transform_2, window_bounds = array<i64: 16, 1>}, {transform_indices = @transform_3, window_bounds = array<i64: 2, 16, 128>}, {transform_indices = @transform_4, window_bounds = array<i64: 1, 16, 1>}, {transform_indices = @transform_5, window_bounds = array<i64: 1, 16, 1>}]} {
    %c0 = arith.constant 0 : index
    %c0_0 = arith.constant 0 : index
    %0 = vector.load %arg2[%c0, %c0_0] : memref<16x56xf32, #tpu.memory_space<vmem>>, vector<16x56xf32>
    %c0_1 = arith.constant 0 : index
    %c0_2 = arith.constant 0 : index
    %1 = vector.load %arg3[%c0_1, %c0_2] : memref<16x1xf32, #tpu.memory_space<vmem>>, vector<16x1xf32>
    %cst = arith.constant 0.000000e+00 : f32
    %2 = vector.broadcast %cst : f32 to vector<16x1xf32>
    %cst_3 = arith.constant 0.000000e+00 : f32
    %3 = vector.broadcast %cst_3 : f32 to vector<16x1xf32>
    %c0_4 = arith.constant 0 : index
    %c0_5 = arith.constant 0 : index
    %c0_6 = arith.constant 0 : index
    %4 = vector.load %arg1[%c0_4, %c0_5, %c0_6] : memref<2x8x128xf32, #tpu.memory_space<vmem>>, vector<1x8x128xf32>
    %5 = vector.shape_cast %4 : vector<1x8x128xf32> to vector<8x128xf32>
    %6 = tpu.iota {dimensions = array<i32: 1>} : vector<1x128xi32>
    %c3_i32 = arith.constant 3 : i32
    %7 = tpu.dynamic_rotate %5 by %c3_i32 dim 1 : vector<8x128xf32>, i32 -> vector<8x128xf32>
    %c3_i32_7 = arith.constant 3 : i32
    %8 = vector.broadcast %c3_i32_7 : i32 to vector<1x128xi32>
    %9 = arith.cmpi sge, %6, %8 : vector<1x128xi32>
    %cst_8 = arith.constant 0.000000e+00 : f32
    %10 = vector.shape_cast %9 : vector<1x128xi1> to vector<1x128xi1>
    %11 = vector.broadcast %10 : vector<1x128xi1> to vector<8x128xi1>
    %12 = vector.broadcast %cst_8 : f32 to vector<8x128xf32>
    %13 = arith.select %11, %7, %12 : vector<8x128xi1>, vector<8x128xf32>
    %c2_i32 = arith.constant 2 : i32
    %14 = tpu.dynamic_rotate %5 by %c2_i32 dim 1 : vector<8x128xf32>, i32 -> vector<8x128xf32>
    %c2_i32_9 = arith.constant 2 : i32
    %15 = vector.broadcast %c2_i32_9 : i32 to vector<1x128xi32>
    %16 = arith.cmpi sge, %6, %15 : vector<1x128xi32>
    %cst_10 = arith.constant 0.000000e+00 : f32
    %17 = vector.shape_cast %16 : vector<1x128xi1> to vector<1x128xi1>
    %18 = vector.broadcast %17 : vector<1x128xi1> to vector<8x128xi1>
    %19 = vector.broadcast %cst_10 : f32 to vector<8x128xf32>
    %20 = arith.select %18, %14, %19 : vector<8x128xi1>, vector<8x128xf32>
    %c1_i32 = arith.constant 1 : i32
    %21 = tpu.dynamic_rotate %5 by %c1_i32 dim 1 : vector<8x128xf32>, i32 -> vector<8x128xf32>
    %c1_i32_11 = arith.constant 1 : i32
    %22 = vector.broadcast %c1_i32_11 : i32 to vector<1x128xi32>
    %23 = arith.cmpi sge, %6, %22 : vector<1x128xi32>
    %cst_12 = arith.constant 0.000000e+00 : f32
    %24 = vector.shape_cast %23 : vector<1x128xi1> to vector<1x128xi1>
    %25 = vector.broadcast %24 : vector<1x128xi1> to vector<8x128xi1>
    %26 = vector.broadcast %cst_12 : f32 to vector<8x128xf32>
    %27 = arith.select %25, %21, %26 : vector<8x128xi1>, vector<8x128xf32>
    %c127_i32 = arith.constant 127 : i32
    %28 = tpu.dynamic_rotate %5 by %c127_i32 dim 1 : vector<8x128xf32>, i32 -> vector<8x128xf32>
    %c127_i32_13 = arith.constant 127 : i32
    %29 = vector.broadcast %c127_i32_13 : i32 to vector<1x128xi32>
    %30 = arith.cmpi slt, %6, %29 : vector<1x128xi32>
    %cst_14 = arith.constant 0.000000e+00 : f32
    %31 = vector.shape_cast %30 : vector<1x128xi1> to vector<1x128xi1>
    %32 = vector.broadcast %31 : vector<1x128xi1> to vector<8x128xi1>
    %33 = vector.broadcast %cst_14 : f32 to vector<8x128xf32>
    %34 = arith.select %32, %28, %33 : vector<8x128xi1>, vector<8x128xf32>
    %c126_i32 = arith.constant 126 : i32
    %35 = tpu.dynamic_rotate %5 by %c126_i32 dim 1 : vector<8x128xf32>, i32 -> vector<8x128xf32>
    %c126_i32_15 = arith.constant 126 : i32
    %36 = vector.broadcast %c126_i32_15 : i32 to vector<1x128xi32>
    %37 = arith.cmpi slt, %6, %36 : vector<1x128xi32>
    %cst_16 = arith.constant 0.000000e+00 : f32
    %38 = vector.shape_cast %37 : vector<1x128xi1> to vector<1x128xi1>
    %39 = vector.broadcast %38 : vector<1x128xi1> to vector<8x128xi1>
    %40 = vector.broadcast %cst_16 : f32 to vector<8x128xf32>
    %41 = arith.select %39, %35, %40 : vector<8x128xi1>, vector<8x128xf32>
    %c125_i32 = arith.constant 125 : i32
    %42 = tpu.dynamic_rotate %5 by %c125_i32 dim 1 : vector<8x128xf32>, i32 -> vector<8x128xf32>
    %c125_i32_17 = arith.constant 125 : i32
    %43 = vector.broadcast %c125_i32_17 : i32 to vector<1x128xi32>
    %44 = arith.cmpi slt, %6, %43 : vector<1x128xi32>
    %cst_18 = arith.constant 0.000000e+00 : f32
    %45 = vector.shape_cast %44 : vector<1x128xi1> to vector<1x128xi1>
    %46 = vector.broadcast %45 : vector<1x128xi1> to vector<8x128xi1>
    %47 = vector.broadcast %cst_18 : f32 to vector<8x128xf32>
    %48 = arith.select %46, %42, %47 : vector<8x128xi1>, vector<8x128xf32>
    %49 = tpu.concatenate %13, %20, %27, %5, %34, %41, %48 in 0 : vector<8x128xf32>, vector<8x128xf32>, vector<8x128xf32>, vector<8x128xf32>, vector<8x128xf32>, vector<8x128xf32>, vector<8x128xf32> -> vector<56x128xf32>
    %cst_19 = arith.constant dense<0.000000e+00> : vector<16x128xf32>
    %50 = tpu.matmul %0, %49, %cst_19 {dimension_numbers = #tpu.dot_dimension_numbers<[1], [0], [0], [1], [0, 0, 1, 1], [], []>} : vector<16x56xf32>, vector<56x128xf32>, vector<16x128xf32> -> vector<16x128xf32>
    %51 = vector.broadcast %1 : vector<16x1xf32> to vector<16x128xf32>
    %52 = arith.addf %50, %51 : vector<16x128xf32>
    %cst_20 = arith.constant 0.000000e+00 : f32
    %53 = vector.broadcast %cst_20 : f32 to vector<16x128xf32>
    %54 = arith.cmpf oge, %52, %53 : vector<16x128xf32>
    %cst_21 = arith.constant 0.00999999977 : f32
    %55 = vector.broadcast %cst_21 : f32 to vector<16x128xf32>
    %56 = arith.mulf %55, %52 : vector<16x128xf32>
    %57 = arith.select %54, %52, %56 : vector<16x128xi1>, vector<16x128xf32>
    %58 = arith.truncf %57 : vector<16x128xf32> to vector<16x128xbf16>
    %c0_22 = arith.constant 0 : index
    %c0_23 = arith.constant 0 : index
    %c0_24 = arith.constant 0 : index
    %59 = vector.load %arg4[%c0_22, %c0_23, %c0_24] : memref<2x16x128xbf16, #tpu.memory_space<vmem>>, vector<1x16x128xbf16>
    %60 = vector.shape_cast %59 : vector<1x16x128xbf16> to vector<16x128xbf16>
    %61 = vector.shape_cast %58 : vector<16x128xbf16> to vector<1x16x128xbf16>
    tpu.vector_store %arg4[%c0_22, %c0_23, %c0_24], %61 {strides = array<i32>} : memref<2x16x128xbf16, #tpu.memory_space<vmem>>, vector<1x16x128xbf16>,
    %cst_25 = arith.constant dense<0.000000e+00> : vector<16xf32>
    %62 = vector.multi_reduction <add>, %57, %cst_25 [1] : vector<16x128xf32> to vector<16xf32>
    %63 = vector.shape_cast %62 : vector<16xf32> to vector<16x1xf32>
    %64 = arith.addf %2, %63 : vector<16x1xf32>
    %65 = arith.mulf %57, %57 : vector<16x128xf32>
    %cst_26 = arith.constant dense<0.000000e+00> : vector<16xf32>
    %66 = vector.multi_reduction <add>, %65, %cst_26 [1] : vector<16x128xf32> to vector<16xf32>
    %67 = vector.shape_cast %66 : vector<16xf32> to vector<16x1xf32>
    %68 = arith.addf %3, %67 : vector<16x1xf32>
    %c1 = arith.constant 1 : index
    %c0_27 = arith.constant 0 : index
    %c0_28 = arith.constant 0 : index
    %69 = vector.load %arg1[%c1, %c0_27, %c0_28] : memref<2x8x128xf32, #tpu.memory_space<vmem>>, vector<1x8x128xf32>
    %70 = vector.shape_cast %69 : vector<1x8x128xf32> to vector<8x128xf32>
    %71 = tpu.iota {dimensions = array<i32: 1>} : vector<1x128xi32>
    %c3_i32_29 = arith.constant 3 : i32
    %72 = tpu.dynamic_rotate %70 by %c3_i32_29 dim 1 : vector<8x128xf32>, i32 -> vector<8x128xf32>
    %c3_i32_30 = arith.constant 3 : i32
    %73 = vector.broadcast %c3_i32_30 : i32 to vector<1x128xi32>
    %74 = arith.cmpi sge, %71, %73 : vector<1x128xi32>
    %cst_31 = arith.constant 0.000000e+00 : f32
    %75 = vector.shape_cast %74 : vector<1x128xi1> to vector<1x128xi1>
    %76 = vector.broadcast %75 : vector<1x128xi1> to vector<8x128xi1>
    %77 = vector.broadcast %cst_31 : f32 to vector<8x128xf32>
    %78 = arith.select %76, %72, %77 : vector<8x128xi1>, vector<8x128xf32>
    %c2_i32_32 = arith.constant 2 : i32
    %79 = tpu.dynamic_rotate %70 by %c2_i32_32 dim 1 : vector<8x128xf32>, i32 -> vector<8x128xf32>
    %c2_i32_33 = arith.constant 2 : i32
    %80 = vector.broadcast %c2_i32_33 : i32 to vector<1x128xi32>
    %81 = arith.cmpi sge, %71, %80 : vector<1x128xi32>
    %cst_34 = arith.constant 0.000000e+00 : f32
    %82 = vector.shape_cast %81 : vector<1x128xi1> to vector<1x128xi1>
    %83 = vector.broadcast %82 : vector<1x128xi1> to vector<8x128xi1>
    %84 = vector.broadcast %cst_34 : f32 to vector<8x128xf32>
    %85 = arith.select %83, %79, %84 : vector<8x128xi1>, vector<8x128xf32>
    %c1_i32_35 = arith.constant 1 : i32
    %86 = tpu.dynamic_rotate %70 by %c1_i32_35 dim 1 : vector<8x128xf32>, i32 -> vector<8x128xf32>
    %c1_i32_36 = arith.constant 1 : i32
    %87 = vector.broadcast %c1_i32_36 : i32 to vector<1x128xi32>
    %88 = arith.cmpi sge, %71, %87 : vector<1x128xi32>
    %cst_37 = arith.constant 0.000000e+00 : f32
    %89 = vector.shape_cast %88 : vector<1x128xi1> to vector<1x128xi1>
    %90 = vector.broadcast %89 : vector<1x128xi1> to vector<8x128xi1>
    %91 = vector.broadcast %cst_37 : f32 to vector<8x128xf32>
    %92 = arith.select %90, %86, %91 : vector<8x128xi1>, vector<8x128xf32>
    %c127_i32_38 = arith.constant 127 : i32
    %93 = tpu.dynamic_rotate %70 by %c127_i32_38 dim 1 : vector<8x128xf32>, i32 -> vector<8x128xf32>
    %c127_i32_39 = arith.constant 127 : i32
    %94 = vector.broadcast %c127_i32_39 : i32 to vector<1x128xi32>
    %95 = arith.cmpi slt, %71, %94 : vector<1x128xi32>
    %cst_40 = arith.constant 0.000000e+00 : f32
    %96 = vector.shape_cast %95 : vector<1x128xi1> to vector<1x128xi1>
    %97 = vector.broadcast %96 : vector<1x128xi1> to vector<8x128xi1>
    %98 = vector.broadcast %cst_40 : f32 to vector<8x128xf32>
    %99 = arith.select %97, %93, %98 : vector<8x128xi1>, vector<8x128xf32>
    %c126_i32_41 = arith.constant 126 : i32
    %100 = tpu.dynamic_rotate %70 by %c126_i32_41 dim 1 : vector<8x128xf32>, i32 -> vector<8x128xf32>
    %c126_i32_42 = arith.constant 126 : i32
    %101 = vector.broadcast %c126_i32_42 : i32 to vector<1x128xi32>
    %102 = arith.cmpi slt, %71, %101 : vector<1x128xi32>
    %cst_43 = arith.constant 0.000000e+00 : f32
    %103 = vector.shape_cast %102 : vector<1x128xi1> to vector<1x128xi1>
    %104 = vector.broadcast %103 : vector<1x128xi1> to vector<8x128xi1>
    %105 = vector.broadcast %cst_43 : f32 to vector<8x128xf32>
    %106 = arith.select %104, %100, %105 : vector<8x128xi1>, vector<8x128xf32>
    %c125_i32_44 = arith.constant 125 : i32
    %107 = tpu.dynamic_rotate %70 by %c125_i32_44 dim 1 : vector<8x128xf32>, i32 -> vector<8x128xf32>
    %c125_i32_45 = arith.constant 125 : i32
    %108 = vector.broadcast %c125_i32_45 : i32 to vector<1x128xi32>
    %109 = arith.cmpi slt, %71, %108 : vector<1x128xi32>
    %cst_46 = arith.constant 0.000000e+00 : f32
    %110 = vector.shape_cast %109 : vector<1x128xi1> to vector<1x128xi1>
    %111 = vector.broadcast %110 : vector<1x128xi1> to vector<8x128xi1>
    %112 = vector.broadcast %cst_46 : f32 to vector<8x128xf32>
    %113 = arith.select %111, %107, %112 : vector<8x128xi1>, vector<8x128xf32>
    %114 = tpu.concatenate %78, %85, %92, %70, %99, %106, %113 in 0 : vector<8x128xf32>, vector<8x128xf32>, vector<8x128xf32>, vector<8x128xf32>, vector<8x128xf32>, vector<8x128xf32>, vector<8x128xf32> -> vector<56x128xf32>
    %cst_47 = arith.constant dense<0.000000e+00> : vector<16x128xf32>
    %115 = tpu.matmul %0, %114, %cst_47 {dimension_numbers = #tpu.dot_dimension_numbers<[1], [0], [0], [1], [0, 0, 1, 1], [], []>} : vector<16x56xf32>, vector<56x128xf32>, vector<16x128xf32> -> vector<16x128xf32>
    %116 = vector.broadcast %1 : vector<16x1xf32> to vector<16x128xf32>
    %117 = arith.addf %115, %116 : vector<16x128xf32>
    %cst_48 = arith.constant 0.000000e+00 : f32
    %118 = vector.broadcast %cst_48 : f32 to vector<16x128xf32>
    %119 = arith.cmpf oge, %117, %118 : vector<16x128xf32>
    %cst_49 = arith.constant 0.00999999977 : f32
    %120 = vector.broadcast %cst_49 : f32 to vector<16x128xf32>
    %121 = arith.mulf %120, %117 : vector<16x128xf32>
    %122 = arith.select %119, %117, %121 : vector<16x128xi1>, vector<16x128xf32>
    %123 = arith.truncf %122 : vector<16x128xf32> to vector<16x128xbf16>
    %c1_50 = arith.constant 1 : index
    %c0_51 = arith.constant 0 : index
    %c0_52 = arith.constant 0 : index
    %124 = vector.load %arg4[%c1_50, %c0_51, %c0_52] : memref<2x16x128xbf16, #tpu.memory_space<vmem>>, vector<1x16x128xbf16>
    %125 = vector.shape_cast %124 : vector<1x16x128xbf16> to vector<16x128xbf16>
    %126 = vector.shape_cast %123 : vector<16x128xbf16> to vector<1x16x128xbf16>
    tpu.vector_store %arg4[%c1_50, %c0_51, %c0_52], %126 {strides = array<i32>} : memref<2x16x128xbf16, #tpu.memory_space<vmem>>, vector<1x16x128xbf16>,
    %cst_53 = arith.constant dense<0.000000e+00> : vector<16xf32>
    %127 = vector.multi_reduction <add>, %122, %cst_53 [1] : vector<16x128xf32> to vector<16xf32>
    %128 = vector.shape_cast %127 : vector<16xf32> to vector<16x1xf32>
    %129 = arith.addf %64, %128 : vector<16x1xf32>
    %130 = arith.mulf %122, %122 : vector<16x128xf32>
    %cst_54 = arith.constant dense<0.000000e+00> : vector<16xf32>
    %131 = vector.multi_reduction <add>, %130, %cst_54 [1] : vector<16x128xf32> to vector<16xf32>
    %132 = vector.shape_cast %131 : vector<16xf32> to vector<16x1xf32>
    %133 = arith.addf %68, %132 : vector<16x1xf32>
    %c0_55 = arith.constant 0 : index
    %c0_56 = arith.constant 0 : index
    %c0_57 = arith.constant 0 : index
    %134 = vector.load %arg5[%c0_55, %c0_56, %c0_57] : memref<1x16x1xf32, #tpu.memory_space<vmem>>, vector<1x16x1xf32>
    %135 = vector.shape_cast %134 : vector<1x16x1xf32> to vector<16x1xf32>
    %136 = vector.shape_cast %129 : vector<16x1xf32> to vector<1x16x1xf32>
    tpu.vector_store %arg5[%c0_55, %c0_56, %c0_57], %136 {strides = array<i32>} : memref<1x16x1xf32, #tpu.memory_space<vmem>>, vector<1x16x1xf32>,
    %c0_58 = arith.constant 0 : index
    %c0_59 = arith.constant 0 : index
    %c0_60 = arith.constant 0 : index
    %137 = vector.load %arg6[%c0_58, %c0_59, %c0_60] : memref<1x16x1xf32, #tpu.memory_space<vmem>>, vector<1x16x1xf32>
    %138 = vector.shape_cast %137 : vector<1x16x1xf32> to vector<16x1xf32>
    %139 = vector.shape_cast %133 : vector<16x1xf32> to vector<1x16x1xf32>
    tpu.vector_store %arg6[%c0_58, %c0_59, %c0_60], %139 {strides = array<i32>} : memref<1x16x1xf32, #tpu.memory_space<vmem>>, vector<1x16x1xf32>,
    return
  }
  func.func @transform_0(%arg0: i32) -> (i32, i32, i32) {
    %c0_i32 = arith.constant 0 : i32
    %c0_i32_0 = arith.constant 0 : i32
    %c0_i32_1 = arith.constant 0 : i32
    return %arg0, %c0_i32, %c0_i32_0 : i32, i32, i32
  }
  func.func @transform_1(%arg0: i32) -> (i32, i32) {
    %c0_i32 = arith.constant 0 : i32
    %c0_i32_0 = arith.constant 0 : i32
    %c0_i32_1 = arith.constant 0 : i32
    return %c0_i32, %c0_i32_0 : i32, i32
  }
  func.func @transform_2(%arg0: i32) -> (i32, i32) {
    %c0_i32 = arith.constant 0 : i32
    %c0_i32_0 = arith.constant 0 : i32
    %c0_i32_1 = arith.constant 0 : i32
    return %c0_i32, %c0_i32_0 : i32, i32
  }
  func.func @transform_3(%arg0: i32) -> (i32, i32, i32) {
    %c0_i32 = arith.constant 0 : i32
    %c0_i32_0 = arith.constant 0 : i32
    %c0_i32_1 = arith.constant 0 : i32
    return %arg0, %c0_i32, %c0_i32_0 : i32, i32, i32
  }
  func.func @transform_4(%arg0: i32) -> (i32, i32, i32) {
    %c0_i32 = arith.constant 0 : i32
    %c0_i32_0 = arith.constant 0 : i32
    %c0_i32_1 = arith.constant 0 : i32
    return %arg0, %c0_i32, %c0_i32_0 : i32, i32, i32
  }
  func.func @transform_5(%arg0: i32) -> (i32, i32, i32) {
    %c0_i32 = arith.constant 0 : i32
    %c0_i32_0 = arith.constant 0 : i32
    %c0_i32_1 = arith.constant 0 : i32
    return %arg0, %c0_i32, %c0_i32_0 : i32, i32, i32
  }
}

</mosaic_0001>

<bundles_post_ra>
// kernel: tpu_custom_call.1
= control target key start
LH: loop header
LB: loop body
LE: loop exit
PB: predicated region body
PF: predicated region fallthrough
CT: control target
= control target key end

     0   :  { %11 = vsyncpa [#allocation3], 0  ;;  %s430_s0 = inlined_call_operand.vmem [shape: f32[2,8,128], index: 0, kind: input, shape index: {}]   ;;  %s431_s1 = inlined_call_operand.hbm [shape: f32[16,56], index: 1, kind: input, shape index: {}]   ;;  %s432_s2 = inlined_call_operand.vmem [shape: f32[16,1], index: 2, kind: input, shape index: {}]   ;;  %s433_s3 = inlined_call_operand.hbm [shape: bf16[2,16,128], index: 3, kind: output, shape index: {0}]   ;;  %s434_s4 = inlined_call_operand.vmem [shape: f32[1,16,1], index: 4, kind: output, shape index: {1}]   ;;  %s435_s5 = inlined_call_operand.vmem [shape: f32[1,16,1], index: 5, kind: output, shape index: {2}]  }
   0x1   :  { %12 = vsyncpa [#allocation4], 0  ;;  %s19_s20 = sshll.u32 %s431_s1, 4  ;;  %s349_s21 = smov [#allocation2]   ;;  %s20_s20 = int_to_ptr.hbm [resolvable:$true] %s19_s20 }
   0x2   :  { %s21_s22 = sshll.u32 %s349_s21, 4  ;;  %s350_s23 = smov 128   ;;  %s22_s22 = int_to_ptr.vmem [resolvable:$true] %s21_s22 }
   0x3   :  { %s351_s24 = smov 8  }
   0x4   :  { %27 = dma.hbm_to_vmem [thread:$0]  %s20_s20, 256, %s22_s22, [#allocation3], %s350_s23, %s350_s23, %s351_s24  }
   0x5   :  { %345 = dma.done.wait [#allocation3], 256  }
   0x6   :  { %346 = vsyncadd [#allocation3], 4294967040  ;;  %v38_v0 = vld [vmem:[%s430_s0] sm:$0xff]  ;;  %s352_s27 = smov 126   ;;  %s353_s28 = smov 125   ;;  %v249_v1 = vld [vmem:[%s430_s0 + $0x8] sm:$0xff]  ;;  %v39_v2 = vlaneseq }
   0x7   :  { %65 = vrot.lane.b32.xlu1 %v38_v0, %s352_s27  ;;  %71 = vrot.lane.b32.xlu0 %v38_v0, %s353_s28  ;;  %s354_s29 = smov 127   ;;  %s355_s6 = smov 1   ;;  %v36_v5 = vld [vmem:[%s432_s2] sm:$0xff]  ;;  %v37_v6 = vld [vmem:[%s432_s2 + $0x8] sm:$0xff]  ;;  %v358_v7 = vmov 0   ;;  %vm87_vm6 = vcmask 457728  }
   0x8   :  { %59 = vrot.lane.b32.xlu2 %v38_v0, %s354_s29  ;;  %s356_s7 = smov 2   ;;  %s357_s8 = smov 3   ;;  %v40_v3 = vand.u32 127, %v39_v2  ;;  %295 = vset.pattern.permute.xlu0 %v358_v7  ;;  %v34_v18 = vld [vmem:[#allocation2] sm:$0xff]  ;;  %v35_v19 = vld [vmem:[#allocation2 + $0x8] sm:$0xff]  ;;  %vm209_vm11 = vcmask 7168  }
   0x9   :  { %296 = vset.pattern.permute.xlu1 %v358_v7  ;;  %s359_s2 = smov [#allocation5]   ;;  %s220_s15 = sshll.u32 %s433_s3, 4  ;;  %s221_s15 = int_to_ptr.hbm [resolvable:$true] %s220_s15 }
   0xa   :  { %vm73_vm0 = vcmp.lt.s32.totalorder %v40_v3, 125  ;;  %vm67_vm1 = vcmp.lt.s32.totalorder %v40_v3, 126  ;;  %vm61_vm2 = vcmp.lt.s32.totalorder %v40_v3, 127  ;;  %vm55_vm3 = vcmp.ge.s32.totalorder %v40_v3, 1  ;;  %s218_s12 = sshll.u32 %s359_s2, 4  ;;  %s360_s16 = smov 64   ;;  %s219_s12 = int_to_ptr.vmem [resolvable:$true] %s218_s12 }
   0xb   :  { %vm49_vm4 = vcmp.ge.s32.totalorder %v40_v3, 2  ;;  %vm43_vm5 = vcmp.ge.s32.totalorder %v40_v3, 3  ;;  %s361_s17 = smov 4  }
   0xf   :  { %155 = vrot.lane.b32.xlu1 %v249_v1, %s352_s27  ;;  %158 = vrot.lane.b32.xlu0 %v249_v1, %s353_s28 }
  0x10   :  { %152 = vrot.lane.b32.xlu2 %v249_v1, %s354_s29 }
  0x17   :  { %149 = vrot.lane.b32.xlu1 %v249_v1, %s355_s6  ;;  %53 = vrot.lane.b32.xlu0 %v38_v0, %s355_s6 }
  0x18   :  { %47 = vrot.lane.b32.xlu2 %v38_v0, %s356_s7 }
  0x1f   :  { %41 = vrot.lane.b32.xlu1 %v38_v0, %s357_s8  ;;  %146 = vrot.lane.b32.xlu0 %v249_v1, %s356_s7 }
  0x20   :  { %143 = vrot.lane.b32.xlu2 %v249_v1, %s357_s8 }
  0x27   :  { %79 = vperm.xlu0 %295, %v36_v5   ;;  %84 = vperm.xlu1 %296, %v37_v6  }
  0x62   :  { %v60_v4 = vpop.permute.xlu2 %59 }
  0x6a   :  { %v153_v10 = vpop.permute.xlu2 %152 }
  0x72   :  { %v48_v13 = vpop.permute.xlu2 %47 }
  0x79   :  { %v66_v8 = vpop.permute.xlu1 %65  ;;  %v72_v9 = vpop.permute.xlu0 %71 }
  0x7a   :  { %241 = vmatpush.msk.msra.mxu0 %vm73_vm0, %v72_v9  ;;  %268 = vmatpush.msk.msra.mxu2 %vm73_vm0, %v72_v9  ;;  %v144_v20 = vpop.permute.xlu2 %143 }
  0x7c   :  { %242 = vmatpush.msk.msra.mxu0 %vm67_vm1, %v66_v8  ;;  %269 = vmatpush.msk.msra.mxu2 %vm67_vm1, %v66_v8 }
  0x7e   :  { %243 = vmatpush.msk.msra.mxu0 %vm61_vm2, %v60_v4  ;;  %270 = vmatpush.msk.msra.mxu2 %vm61_vm2, %v60_v4 }
  0x80   :  { %106 = vmatpush.msra.mxu0 %v38_v0  ;;  %271 = vmatpush.msra.mxu2 %v38_v0 }
  0x81   :  { %v156_v11 = vpop.permute.xlu1 %155  ;;  %v159_v12 = vpop.permute.xlu0 %158 }
  0x82   :  { %250 = vmatpush.msk.msra.mxu1 %vm73_vm0, %v159_v12  ;;  %275 = vmatpush.msk.msra.mxu3 %vm73_vm0, %v159_v12 }
  0x84   :  { %251 = vmatpush.msk.msra.mxu1 %vm67_vm1, %v156_v11  ;;  %276 = vmatpush.msk.msra.mxu3 %vm67_vm1, %v156_v11 }
  0x86   :  { %252 = vmatpush.msk.msra.mxu1 %vm61_vm2, %v153_v10  ;;  %277 = vmatpush.msk.msra.mxu3 %vm61_vm2, %v153_v10 }
  0x88   :  { %173 = vmatpush.msra.mxu1 %v249_v1  ;;  %278 = vmatpush.msra.mxu3 %v249_v1 }
  0x89   :  { %v150_v14 = vpop.permute.xlu1 %149  ;;  %v54_v15 = vpop.permute.xlu0 %53 }
  0x8a   :  { %253 = vmatpush.msk.msra.mxu1 %vm55_vm3, %v150_v14  ;;  %279 = vmatpush.msk.msra.mxu3 %vm55_vm3, %v150_v14 }
  0x8b   :  { %244 = vmatpush.msk.msra.mxu0 %vm55_vm3, %v54_v15  ;;  %272 = vmatpush.msk.msra.mxu2 %vm55_vm3, %v54_v15 }
  0x8d   :  { %245 = vmatpush.msk.msra.mxu0 %vm49_vm4, %v48_v13  ;;  %273 = vmatpush.msk.msra.mxu2 %vm49_vm4, %v48_v13 }
  0x91   :  { %v42_v16 = vpop.permute.xlu1 %41  ;;  %v147_v17 = vpop.permute.xlu0 %146 }
  0x92   :  { %246 = vmatpush.msk.msra.mxu0 %vm43_vm5, %v42_v16  ;;  %274 = vmatpush.msk.msra.mxu2 %vm43_vm5, %v42_v16 }
  0x93   :  { %254 = vmatpush.msk.msra.mxu1 %vm49_vm4, %v147_v17  ;;  %280 = vmatpush.msk.msra.mxu3 %vm49_vm4, %v147_v17 }
  0x94   :  { %247 = vmatmul.msk.f32.vlgmr.msra.gmra.mxu0 %vm87_vm6, %v34_v18  ;;  %248 = vmatmul.msk.f32.vlgmr.msra.gmra.mxu2 %vm87_vm6, %v35_v19 }
  0x95   :  { %255 = vmatpush.msk.msra.mxu1 %vm43_vm5, %v144_v20  ;;  %281 = vmatpush.msk.msra.mxu3 %vm43_vm5, %v144_v20 }
  0x96   :  { %256 = vmatmul.msk.f32.vlgmr.msra.gmra.mxu1 %vm87_vm6, %v34_v18  ;;  %257 = vmatmul.msk.f32.vlgmr.msra.gmra.mxu3 %vm87_vm6, %v35_v19 }
  0x99   :  { %v80_v21 = vpop.permute.xlu0 %79  ;;  %v85_v26 = vpop.permute.xlu1 %84 }
 0x111   :  { %v111_v22 = vpop.f32.mrf.mxu0 }
 0x112   :  { %v112_v23 = vadd.f32 %v111_v22, %v80_v21 }
 0x113   :  { %v178_v24 = vpop.f32.mrf.mxu1 }
 0x114   :  { %v119_v25 = vmul.f32 0.01, %v112_v23  ;;  %vm117_vm7 = vcmp.ge.f32.partialorder %v112_v23, 0.0  ;;  %v179_v27 = vadd.f32 %v178_v24, %v80_v21 }
 0x116   :  { %v121_v28 = vsel %vm117_vm7, %v112_v23, %v119_v25  ;;  %v186_v33 = vmul.f32 0.01, %v179_v27  ;;  %vm184_vm9 = vcmp.ge.f32.partialorder %v179_v27, 0.0 }
 0x117   :  { %v114_v29 = vpop.f32.mrf.mxu2  ;;  %127 = vadd.xlane.f32.xlu2 %v121_v28  ;;  %v133_v30 = vmul.f32 %v121_v28, %v121_v28 }
 0x118   :  { %v115_v31 = vadd.f32 %v114_v29, %v85_v26  ;;  %v188_v39 = vsel %vm184_vm9, %v179_v27, %v186_v33 }
 0x119   :  { %v181_v32 = vpop.f32.mrf.mxu3  ;;  %135 = vadd.xlane.f32.xlu0 %v133_v30  ;;  %v201_v44 = vmul.f32 %v188_v39, %v188_v39 }
 0x11a   :  { %v120_v34 = vmul.f32 0.01, %v115_v31  ;;  %v182_v35 = vadd.f32 %v181_v32, %v85_v26  ;;  %vm118_vm8 = vcmp.ge.f32.partialorder %v115_v31, 0.0 }
 0x11c   :  { %v187_v36 = vmul.f32 0.01, %v182_v35  ;;  %v122_v37 = vsel %vm118_vm8, %v115_v31, %v120_v34  ;;  %vm185_vm10 = vcmp.ge.f32.partialorder %v182_v35, 0.0 }
 0x11d   :  { %129 = vadd.xlane.f32.xlu1 %v122_v37  ;;  %v261_v38 = vpack.c.bf16 %v122_v37, %v121_v28  ;;  %v134_v43 = vmul.f32 %v122_v37, %v122_v37 }
 0x11e   :  { %v189_v40 = vsel %vm185_vm10, %v182_v35, %v187_v36 }
 0x11f   :  { %262 = vst [vmem:[#allocation5] sm:$0xff] %v261_v38   ;;  %195 = vadd.xlane.f32.xlu2 %v188_v39  ;;  %v266_v41 = vpack.c.bf16 %v189_v40, %v188_v39  ;;  %v202_v42 = vmul.f32 %v189_v40, %v189_v40 }
 0x121   :  { %267 = vst [vmem:[#allocation5 + $0x8] sm:$0xff] %v266_v41   ;;  %205 = vadd.xlane.f32.xlu0 %v202_v42 }
 0x122   :  { %226 = dma.vmem_to_hbm [thread:$0]  %s219_s12, 256, %s221_s15, [#allocation4], %s360_s16, %s360_s16, %s361_s17  }
 0x125   :  { %197 = vadd.xlane.f32.xlu1 %v189_v40 }
 0x127   :  { %137 = vadd.xlane.f32.xlu2 %v134_v43 }
 0x12f   :  { %203 = vadd.xlane.f32.xlu2 %v201_v44 }
 0x18a   :  { %v128_v45 = vpop.xlane.xlu2 %127 }
 0x18c   :  { %v136_v47 = vpop.xlane.xlu0 %135 }
 0x190   :  { %v130_v46 = vpop.xlane.xlu1 %129 }
 0x192   :  { %v196_v48 = vpop.xlane.xlu2 %195 }
 0x193   :  { %v199_v49 = vadd.f32 %v196_v48, %v128_v45 }
 0x194   :  { %v206_v52 = vpop.xlane.xlu0 %205 }
 0x195   :  { %210 = vst.msk [vmem:[%s434_s4] sm:$0xff] %vm209_vm11, %v199_v49 }
 0x198   :  { %v198_v50 = vpop.xlane.xlu1 %197 }
 0x199   :  { %v200_v51 = vadd.f32 %v198_v50, %v130_v46 }
 0x19a   :  { %v138_v53 = vpop.xlane.xlu2 %137 }
 0x19b   :  { %211 = vst.msk [vmem:[%s434_s4 + $0x8] sm:$0xff] %vm209_vm11, %v200_v51  ;;  %v208_v54 = vadd.f32 %v206_v52, %v138_v53 }
 0x19d   :  { %213 = vst.msk [vmem:[%s435_s5 + $0x8] sm:$0xff] %vm209_vm11, %v208_v54 }
 0x1a2   :  { %v204_v55 = vpop.xlane.xlu2 %203 }
 0x1a3   :  { %v207_v56 = vadd.f32 %v204_v55, %v136_v47 }
 0x1a5   :  { %212 = vst.msk [vmem:[%s435_s5] sm:$0xff] %vm209_vm11, %v207_v56 }
 0x1a6   :  { %347 = dma.done.wait [#allocation4], 256  }
 0x1a7   :  { %348 = vsyncadd [#allocation4], 4294967040 }
 0x1a8   :  { %239 = vsyncpa [#allocation3], 1 }
 0x1a9   :  { %240 = vsyncpa [#allocation4], 1 }

</bundles_post_ra>
